<compile_context>
chip_gen: v7x
topology: tpu7x:2x2x1
jax: 0.10.0
libtpu: 0.0.40
codegen_flags: <defaults>
</compile_context>

<pallas_src>
import jax
import jax.numpy as jnp
from jax import lax
from jax.experimental import pallas as pl
from jax.experimental.pallas import tpu as pltpu


def make_critic_kernel(num_hidden_layers):
    """Kernel for `num_hidden_layers` hidden linears + 1 output linear (out=1)."""

    def kernel(*refs):
        # refs = (s, a, w1s, w1a, b1, [w_i, b_i]*(num_hidden-1), w_out_row, b_out, o)
        s_ref, a_ref, w1s_ref, w1a_ref, b1_ref = refs[:5]
        o_ref = refs[-1]
        mid = refs[5:-1]

        # Layer 1: split matmul replaces concat([s, a]) @ W1.
        h = jnp.dot(s_ref[...], w1s_ref[...], preferred_element_type=jnp.float32)
        h = h + jnp.dot(a_ref[...], w1a_ref[...], preferred_element_type=jnp.float32)
        h = h + b1_ref[...]

        # Remaining hidden layers: plain MXU matmul + bias.
        idx = 0
        for _ in range(num_hidden_layers - 1):
            w_ref, b_ref = mid[idx], mid[idx + 1]
            idx += 2
            h = jnp.dot(h, w_ref[...], preferred_element_type=jnp.float32) + b_ref[...]

        # Output layer (out_features == 1), produced lane-dense as a [1, tb] row:
        # q_row = w_out_row [1,H] contracted with h [tb,H] over H (A @ B^T form).
        w_out_ref, b_out_ref = mid[idx], mid[idx + 1]  # [1, H_last], [1, 1]
        q_row = lax.dot_general(
            w_out_ref[...], h,
            dimension_numbers=(((1,), (1,)), ((), ())),
            preferred_element_type=jnp.float32)        # [1, tb]
        q_row = q_row + b_out_ref[...]                  # broadcast [1,1] -> [1,tb]
        o_ref[...] = q_row.reshape(o_ref.shape).astype(o_ref.dtype)

    return kernel


def pack_critic_params(params, state_dim):
    """One-time repack of ((Wt,b),...) into the flat kernel operand list.

    params[k] = (W_t [in,out], b [1,out]).  Output layout:
      [W1_s, W1_a, b1, W2, b2, ..., W_n, b_n, W_out_row [1,H_last], b_out [1,1]]
    """
    assert len(params) >= 2, "expect at least one hidden layer + output layer"
    w1, b1 = params[0]
    packed = [w1[:state_dim, :], w1[state_dim:, :], b1]
    for w, b in params[1:-1]:
        packed += [w, b]
    w_out, b_out = params[-1]          # [H_last, 1], [1, 1]
    packed += [w_out.T, b_out]         # output weight stored as a [1, H_last] row
    return packed


def _round8(x):
    return max(8, ((int(x) + 7) // 8) * 8)


def critic_forward(state, action, packed_params, *, block_batch=2048,
                   vmem_budget_bytes=24 * 1024 * 1024):
    """state: [B, state_dim], action: [B, action_dim]; params from pack_critic_params."""
    batch, state_dim = state.shape
    action_dim = action.shape[1]
    num_hidden = (len(packed_params) - 3) // 2

    # ---- batch tile selection -------------------------------------------
    # * multiple of 8 (f32 sublane rule on the block's second-to-last dim)
    # * >= 2 grid steps once batch >= 16 so ("parallel",) can use both v7x TCs
    # * capped so double-buffered I/O blocks + ~3 live [tb, H] intermediates
    #   + resident weights fit a conservative VMEM budget
    tb_user = max(8, (int(block_batch) // 8) * 8)
    tb_split = _round8((batch + 1) // 2)
    tb_full = _round8(batch)

    max_width = max([state_dim + action_dim]
                    + [int(p.shape[-1]) for p in packed_params])
    weight_bytes = 2 * sum(int(p.size) * p.dtype.itemsize for p in packed_params)
    per_row_bytes = 4 * (2 * (state_dim + action_dim)   # double-buffered inputs
                         + 2 * 1                        # double-buffered output row
                         + 3 * max_width)               # live f32 intermediates
    tb_vmem = max(
        8, (int(max(vmem_budget_bytes - weight_bytes, 0)) // per_row_bytes) // 8 * 8)

    tb = max(8, min(tb_user, tb_split, tb_full, tb_vmem))
    num_tiles = pl.cdiv(batch, tb)
    grid = (num_tiles,)

    # Activations are batch-tiled; weights/biases stay VMEM-resident (constant
    # block index -> DMA'd once). No input padding: the edge block is clipped
    # by Pallas; garbage pad rows only land in output rows that are sliced away.
    state_spec = pl.BlockSpec((tb, state_dim), lambda i: (i, 0))
    action_spec = pl.BlockSpec((tb, action_dim), lambda i: (i, 0))
    weight_specs = [pl.BlockSpec(p.shape, lambda i: (0, 0)) for p in packed_params]
    # Lane-dense output: one (1, 1, tb) row block per grid step.
    out_spec = pl.BlockSpec((1, 1, tb), lambda i: (i, 0, 0))

    out = pl.pallas_call(
        make_critic_kernel(num_hidden),
        out_shape=jax.ShapeDtypeStruct((num_tiles, 1, tb), jnp.float32),
        grid=grid,
        in_specs=[state_spec, action_spec] + weight_specs,
        out_specs=out_spec,
        compiler_params=pltpu.CompilerParams(
            dimension_semantics=("parallel",),
            vmem_limit_bytes=32 * 1024 * 1024),
    )(state, action, *packed_params)

    return out.reshape(num_tiles * tb, 1)[:batch]


def init_critic_params(key, state_dim, action_dim, hidden_sizes):
    """Deterministic init mimicking torch.nn.Linear (U[-1/sqrt(fan_in), +])."""
    dims = [state_dim + action_dim] + list(hidden_sizes) + [1]
    params = []
    for i in range(len(dims) - 1):
        fan_in, fan_out = dims[i], dims[i + 1]
        key, kw, kb = jax.random.split(key, 3)
        bound = 1.0 / jnp.sqrt(fan_in)
        # stored as [in, out] (i.e. transpose of torch's [out, in])
        w_t = jax.random.uniform(kw, (fan_in, fan_out), jnp.float32, -bound, bound)
        b = jax.random.uniform(kb, (1, fan_out), jnp.float32, -bound, bound)
        params.append((w_t, b))
    return params


def critic_reference(state, action, params):
    x = jnp.concatenate([state, action], axis=-1)
    for w_t, b in params:
        x = x @ w_t + b
    return x


if __name__ == "__main__":
    # Full f32 matmuls everywhere so kernel and reference match tightly.
    jax.config.update("jax_default_matmul_precision", "highest")

    # Hopper-v5: obs dim 11, action dim 3; small lane-friendly hidden sizes.
    state_dim, action_dim = 11, 3
    hidden_sizes = [128, 128]

    key = jax.random.PRNGKey(0)
    key, kp = jax.random.split(key)
    params = init_critic_params(kp, state_dim, action_dim, hidden_sizes)
    packed = pack_critic_params(params, state_dim)

    # Test 1: tiny batch (single grid step).
    key, ks, ka = jax.random.split(key, 3)
    b1 = 8
    s1 = jax.random.normal(ks, (b1, state_dim), jnp.float32)
    a1 = jax.random.normal(ka, (b1, action_dim), jnp.float32)
    q1 = jax.block_until_ready(critic_forward(s1, a1, packed))
    assert q1.shape == (b1, 1)
    assert jnp.allclose(q1, critic_reference(s1, a1, params), atol=1e-4, rtol=1e-4)

    # Test 2: ragged batch with a tiny tile -> grid=(3,), clipped edge block,
    # resident weights, lane-dense output path (batch=20, TB=8).
    key, ks, ka = jax.random.split(key, 3)
    b2 = 20
    s2 = jax.random.normal(ks, (b2, state_dim), jnp.float32)
    a2 = jax.random.normal(ka, (b2, action_dim), jnp.float32)
    q2 = jax.block_until_ready(critic_forward(s2, a2, packed, block_batch=8))
    assert q2.shape == (b2, 1)
    assert jnp.allclose(q2, critic_reference(s2, a2, params), atol=1e-4, rtol=1e-4)

    # Test 3: batch large enough to auto-split into >=2 tiles (v7x dual-TC
    # path) with a ragged edge (batch=300 -> tb=152, grid=(2,)).
    key, ks, ka = jax.random.split(key, 3)
    b3 = 300
    s3 = jax.random.normal(ks, (b3, state_dim), jnp.float32)
    a3 = jax.random.normal(ka, (b3, action_dim), jnp.float32)
    q3 = jax.block_until_ready(critic_forward(s3, a3, packed))
    assert q3.shape == (b3, 1)
    assert jnp.allclose(q3, critic_reference(s3, a3, params), atol=1e-4, rtol=1e-4)

    print("KERNEL_OK")
</pallas_src>

<mosaic_0001>
module attributes {stable_mosaic.version = 11 : i64} {
  func.func @kernel(%arg0: i32, %arg1: memref<8x11xf32, #tpu.memory_space<vmem>>, %arg2: memref<8x3xf32, #tpu.memory_space<vmem>>, %arg3: memref<11x128xf32, #tpu.memory_space<vmem>>, %arg4: memref<3x128xf32, #tpu.memory_space<vmem>>, %arg5: memref<1x128xf32, #tpu.memory_space<vmem>>, %arg6: memref<128x128xf32, #tpu.memory_space<vmem>>, %arg7: memref<1x128xf32, #tpu.memory_space<vmem>>, %arg8: memref<1x128xf32, #tpu.memory_space<vmem>>, %arg9: memref<1x1xf32, #tpu.memory_space<vmem>>, %arg10: memref<1x1x8xf32, #tpu.memory_space<vmem>>) attributes {dimension_semantics = [#tpu.dimension_semantics<parallel>], iteration_bounds = array<i64: 1>, scalar_prefetch = 0 : i64, scratch_operands = 0 : i64, tpu.core_type = #tpu.core_type<tc>, window_params = [{transform_indices = @transform_0, window_bounds = array<i64: 8, 11>}, {transform_indices = @transform_1, window_bounds = array<i64: 8, 3>}, {pipeline_mode = #tpu.pipeline_mode<synchronous>, transform_indices = @transform_2, window_bounds = array<i64: 11, 128>}, {pipeline_mode = #tpu.pipeline_mode<synchronous>, transform_indices = @transform_3, window_bounds = array<i64: 3, 128>}, {pipeline_mode = #tpu.pipeline_mode<synchronous>, transform_indices = @transform_4, window_bounds = array<i64: 1, 128>}, {pipeline_mode = #tpu.pipeline_mode<synchronous>, transform_indices = @transform_5, window_bounds = array<i64: 128, 128>}, {pipeline_mode = #tpu.pipeline_mode<synchronous>, transform_indices = @transform_6, window_bounds = array<i64: 1, 128>}, {pipeline_mode = #tpu.pipeline_mode<synchronous>, transform_indices = @transform_7, window_bounds = array<i64: 1, 128>}, {pipeline_mode = #tpu.pipeline_mode<synchronous>, transform_indices = @transform_8, window_bounds = array<i64: 1, 1>}, {transform_indices = @transform_9, window_bounds = array<i64: 1, 1, 8>}]} {
    %c0 = arith.constant 0 : index
    %c0_0 = arith.constant 0 : index
    %0 = vector.load %arg1[%c0, %c0_0] : memref<8x11xf32, #tpu.memory_space<vmem>>, vector<8x11xf32>
    %c0_1 = arith.constant 0 : index
    %c0_2 = arith.constant 0 : index
    %1 = vector.load %arg3[%c0_1, %c0_2] : memref<11x128xf32, #tpu.memory_space<vmem>>, vector<11x128xf32>
    %cst = arith.constant dense<0.000000e+00> : vector<8x128xf32>
    %2 = tpu.matmul %0, %1, %cst {dimension_numbers = #tpu.dot_dimension_numbers<[1], [0], [0], [1], [0, 0, 1, 1], [], []>, precision = #tpu.contract_precision<fp32>} : vector<8x11xf32>, vector<11x128xf32>, vector<8x128xf32> -> vector<8x128xf32>
    %c0_3 = arith.constant 0 : index
    %c0_4 = arith.constant 0 : index
    %3 = vector.load %arg2[%c0_3, %c0_4] : memref<8x3xf32, #tpu.memory_space<vmem>>, vector<8x3xf32>
    %c0_5 = arith.constant 0 : index
    %c0_6 = arith.constant 0 : index
    %4 = vector.load %arg4[%c0_5, %c0_6] : memref<3x128xf32, #tpu.memory_space<vmem>>, vector<3x128xf32>
    %cst_7 = arith.constant dense<0.000000e+00> : vector<8x128xf32>
    %5 = tpu.matmul %3, %4, %cst_7 {dimension_numbers = #tpu.dot_dimension_numbers<[1], [0], [0], [1], [0, 0, 1, 1], [], []>, precision = #tpu.contract_precision<fp32>} : vector<8x3xf32>, vector<3x128xf32>, vector<8x128xf32> -> vector<8x128xf32>
    %6 = arith.addf %2, %5 : vector<8x128xf32>
    %c0_8 = arith.constant 0 : index
    %c0_9 = arith.constant 0 : index
    %7 = vector.load %arg5[%c0_8, %c0_9] : memref<1x128xf32, #tpu.memory_space<vmem>>, vector<1x128xf32>
    %8 = vector.broadcast %7 : vector<1x128xf32> to vector<8x128xf32>
    %9 = arith.addf %6, %8 : vector<8x128xf32>
    %c0_10 = arith.constant 0 : index
    %c0_11 = arith.constant 0 : index
    %10 = vector.load %arg6[%c0_10, %c0_11] : memref<128x128xf32, #tpu.memory_space<vmem>>, vector<128x128xf32>
    %cst_12 = arith.constant dense<0.000000e+00> : vector<8x128xf32>
    %11 = tpu.matmul %9, %10, %cst_12 {dimension_numbers = #tpu.dot_dimension_numbers<[1], [0], [0], [1], [0, 0, 1, 1], [], []>, precision = #tpu.contract_precision<fp32>} : vector<8x128xf32>, vector<128x128xf32>, vector<8x128xf32> -> vector<8x128xf32>
    %c0_13 = arith.constant 0 : index
    %c0_14 = arith.constant 0 : index
    %12 = vector.load %arg7[%c0_13, %c0_14] : memref<1x128xf32, #tpu.memory_space<vmem>>, vector<1x128xf32>
    %13 = vector.broadcast %12 : vector<1x128xf32> to vector<8x128xf32>
    %14 = arith.addf %11, %13 : vector<8x128xf32>
    %c0_15 = arith.constant 0 : index
    %c0_16 = arith.constant 0 : index
    %15 = vector.load %arg8[%c0_15, %c0_16] : memref<1x128xf32, #tpu.memory_space<vmem>>, vector<1x128xf32>
    %cst_17 = arith.constant dense<0.000000e+00> : vector<1x8xf32>
    %16 = tpu.matmul %15, %14, %cst_17 {dimension_numbers = #tpu.dot_dimension_numbers<[1], [1], [0], [0], [0, 0, 1, 0], [], []>, precision = #tpu.contract_precision<fp32>} : vector<1x128xf32>, vector<8x128xf32>, vector<1x8xf32> -> vector<1x8xf32>
    %c0_18 = arith.constant 0 : index
    %c0_19 = arith.constant 0 : index
    %17 = vector.load %arg9[%c0_18, %c0_19] : memref<1x1xf32, #tpu.memory_space<vmem>>, vector<1x1xf32>
    %18 = vector.broadcast %17 : vector<1x1xf32> to vector<1x8xf32>
    %19 = arith.addf %16, %18 : vector<1x8xf32>
    %20 = vector.shape_cast %19 : vector<1x8xf32> to vector<1x1x8xf32>
    %c0_20 = arith.constant 0 : index
    %c0_21 = arith.constant 0 : index
    %c0_22 = arith.constant 0 : index
    %21 = vector.load %arg10[%c0_20, %c0_21, %c0_22] : memref<1x1x8xf32, #tpu.memory_space<vmem>>, vector<1x1x8xf32>
    tpu.vector_store %arg10[%c0_20, %c0_21, %c0_22], %20 {strides = array<i32>} : memref<1x1x8xf32, #tpu.memory_space<vmem>>, vector<1x1x8xf32>,
    return
  }
  func.func @transform_0(%arg0: i32) -> (i32, i32) {
    %c0_i32 = arith.constant 0 : i32
    %c0_i32_0 = arith.constant 0 : i32
    return %arg0, %c0_i32 : i32, i32
  }
  func.func @transform_1(%arg0: i32) -> (i32, i32) {
    %c0_i32 = arith.constant 0 : i32
    %c0_i32_0 = arith.constant 0 : i32
    return %arg0, %c0_i32 : i32, i32
  }
  func.func @transform_2(%arg0: i32) -> (i32, i32) {
    %c0_i32 = arith.constant 0 : i32
    %c0_i32_0 = arith.constant 0 : i32
    %c0_i32_1 = arith.constant 0 : i32
    return %c0_i32, %c0_i32_0 : i32, i32
  }
  func.func @transform_3(%arg0: i32) -> (i32, i32) {
    %c0_i32 = arith.constant 0 : i32
    %c0_i32_0 = arith.constant 0 : i32
    %c0_i32_1 = arith.constant 0 : i32
    return %c0_i32, %c0_i32_0 : i32, i32
  }
  func.func @transform_4(%arg0: i32) -> (i32, i32) {
    %c0_i32 = arith.constant 0 : i32
    %c0_i32_0 = arith.constant 0 : i32
    %c0_i32_1 = arith.constant 0 : i32
    return %c0_i32, %c0_i32_0 : i32, i32
  }
  func.func @transform_5(%arg0: i32) -> (i32, i32) {
    %c0_i32 = arith.constant 0 : i32
    %c0_i32_0 = arith.constant 0 : i32
    %c0_i32_1 = arith.constant 0 : i32
    return %c0_i32, %c0_i32_0 : i32, i32
  }
  func.func @transform_6(%arg0: i32) -> (i32, i32) {
    %c0_i32 = arith.constant 0 : i32
    %c0_i32_0 = arith.constant 0 : i32
    %c0_i32_1 = arith.constant 0 : i32
    return %c0_i32, %c0_i32_0 : i32, i32
  }
  func.func @transform_7(%arg0: i32) -> (i32, i32) {
    %c0_i32 = arith.constant 0 : i32
    %c0_i32_0 = arith.constant 0 : i32
    %c0_i32_1 = arith.constant 0 : i32
    return %c0_i32, %c0_i32_0 : i32, i32
  }
  func.func @transform_8(%arg0: i32) -> (i32, i32) {
    %c0_i32 = arith.constant 0 : i32
    %c0_i32_0 = arith.constant 0 : i32
    %c0_i32_1 = arith.constant 0 : i32
    return %c0_i32, %c0_i32_0 : i32, i32
  }
  func.func @transform_9(%arg0: i32) -> (i32, i32, i32) {
    %c0_i32 = arith.constant 0 : i32
    %c0_i32_0 = arith.constant 0 : i32
    %c0_i32_1 = arith.constant 0 : i32
    return %arg0, %c0_i32, %c0_i32_0 : i32, i32, i32
  }
}

</mosaic_0001>

<bundles_post_ra>
// kernel: tpu_custom_call.1
= control target key start
LH: loop header
LB: loop body
LE: loop exit
PB: predicated region body
PF: predicated region fallthrough
CT: control target
= control target key end

     0   :  { %s3305_s0 = inlined_call_operand.hbm [shape: f32[8,11], index: 0, kind: input, shape index: {}]   ;;  %s3306_s1 = inlined_call_operand.vmem [shape: f32[8,3], index: 1, kind: input, shape index: {}]   ;;  %s3307_s2 = inlined_call_operand.vmem [shape: f32[11,128], index: 2, kind: input, shape index: {}]   ;;  %s3308_s3 = inlined_call_operand.vmem [shape: f32[3,128], index: 3, kind: input, shape index: {}]   ;;  %s3309_s4 = inlined_call_operand.vmem [shape: f32[1,128], index: 4, kind: input, shape index: {}]   ;;  %s3310_s5 = inlined_call_operand.hbm [shape: f32[128,128], index: 5, kind: input, shape index: {}]   ;;  %s3311_s6 = inlined_call_operand.vmem [shape: f32[1,128], index: 6, kind: input, shape index: {}]   ;;  %s3312_s7 = inlined_call_operand.vmem [shape: f32[1,128], index: 7, kind: input, shape index: {}]   ;;  %s3313_s8 = inlined_call_operand.<no memory space> [shape: f32[1,1], index: 8, kind: input, shape index: {}]   ;;  %s3314_s9 = inlined_call_operand.hbm [shape: f32[1,1,8], index: 9, kind: output, shape index: {}]  }
   0x1   :  { %v14_v0 = vstv %s3313_s8 }
   0x2   :  { %15 = vst [vmem:[#allocation2] sm:$0x1] %v14_v0 }
   0x3   :  { %16 = vsyncpa [#allocation4], 0 }
   0x4   :  { %17 = vsyncpa [#allocation7], 0 }
   0x5   :  { %18 = vsyncpa [#allocation5], 0  ;;  %s2856_s11 = smov [#allocation3]   ;;  %s2857_s13 = smov [#allocation6]  }
   0x6   :  { %s25_s12 = sshll.u32 %s2856_s11, 4  ;;  %s42_s14 = sshll.u32 %s2857_s13, 4  ;;  %s26_s12 = int_to_ptr.vmem [resolvable:$true] %s25_s12  ;;  %s2918_s14 = int_to_ptr.vmem [resolvable:$true] %s42_s14 }
   0x7   :  { %s2784_s17 = scalar_lea.hbm %s3305_s0, 128 }
   0x8   :  { %p2785_p0 = scmp.ne.s32.totalorder %s3305_s0, %s2784_s17  ;;  %p2788_p1 = scmp.lt.u32.totalorder %s2784_s17, %s3305_s0 }
   0xa   :  { %p2790_p2 = pnand %p2788_p1, %p2785_p0 }
   0xc   :  { %2793 = shalt.err (!%p2790_p2)
}
   0xd   :  { %s2794_s21 = scalar_lea.vmem %s26_s12, 128  ;;  %p2799_p4 = scmp.lt.s32.totalorder %s26_s12, %s26_s12 }
   0xe   :  { %p2795_p3 = scmp.ne.s32.totalorder %s26_s12, %s2794_s21  ;;  %p2800_p5 = scmp.lt.s32.totalorder %s2794_s21, %s2794_s21 }
  0x10   :  { %p2801_p6 = por %p2800_p5, %p2799_p4 }
  0x12   :  { %p2802_p7 = pnand %p2801_p6, %p2795_p3 }
  0x14   :  { %2805 = shalt.err (!%p2802_p7)
}
  0x15   :  { %28 = dma.hbm_to_vmem [thread:$0]  %s3305_s0, 128, %s26_s12, [#allocation4]  }
  0x16   :  { %s2806_s26 = scalar_lea.hbm %s3310_s5, 2048 }
  0x17   :  { %p2807_p8 = scmp.ne.s32.totalorder %s3310_s5, %s2806_s26  ;;  %p2810_p9 = scmp.lt.u32.totalorder %s2806_s26, %s3310_s5 }
  0x19   :  { %p2812_p10 = pnand %p2810_p9, %p2807_p8 }
  0x1b   :  { %2815 = shalt.err (!%p2812_p10)
}
  0x1c   :  { %s2816_s10 = scalar_lea.vmem %s2918_s14, 2048  ;;  %p2821_p12 = scmp.lt.s32.totalorder %s2918_s14, %s2918_s14 }
  0x1d   :  { %p2817_p11 = scmp.ne.s32.totalorder %s2918_s14, %s2816_s10  ;;  %p2822_p13 = scmp.lt.s32.totalorder %s2816_s10, %s2816_s10 }
  0x1f   :  { %p2823_p0 = por %p2822_p13, %p2821_p12 }
  0x21   :  { %p2824_p1 = pnand %p2823_p0, %p2817_p11 }
  0x23   :  { %2827 = shalt.err (!%p2824_p1)
}
  0x24   :  { %s2858_s0 = smov 128   ;;  %s2859_s11 = smov 8  }
  0x25   :  { %48 = dma.hbm_to_vmem [thread:$0]  %s3310_s5, 2048, %s2918_s14, [#allocation7], %s2858_s0, %s2858_s0, %s2859_s11  }
  0x26   :  { %2850 = dma.done.wait [#allocation4], 128  }
  0x27   :  { %2851 = vsyncadd [#allocation4], 4294967168 }
  0x28   :  { %2852 = dma.done.wait [#allocation7], 2048  }
  0x29   :  { %2853 = vsyncadd [#allocation7], 4294965248  ;;  %v3317_v1 = vmov 0.0   ;;  %vm2861_vm0 = vmmov 0   ;;  %vm70_vm1 = vcmask 1042432   ;;  %vm66_vm2 = vcmask 23552  }
  0x2a   :  { %2279 = vmatprep.subr.mxu0 %v3317_v1  ;;  %2281 = vmatprep.mubr.msk.f32.mxu0 %vm2861_vm0, %v3317_v1  ;;  %vm520_vm3 = vcmask 89088   ;;  %v65_v2 = vld [vmem:[%s3308_s3] sm:$0x7]  ;;  %v63_v7 = vld [vmem:[%s3307_s2 + $0x8] sm:$0x7]  ;;  %v3315_v22 = vmov 0.0|0.0  }
  0x2b   :  { %2304 = vmatprep.subr.mxu1 %v3317_v1  ;;  %2306 = vmatprep.mubr.msk.f32.mxu1 %vm2861_vm0, %v3317_v1  ;;  %v64_v3 = vld [vmem:[%s3306_s1] sm:$0xff]  ;;  %v72_v5 = vsel %vm70_vm1, %v65_v2, 0  ;;  %v525_v11 = vsel %vm70_vm1, %v63_v7, 0  ;;  %v994_v41 = vld [vmem:[#allocation6] sm:$0xff]  ;;  %v995_v42 = vld [vmem:[#allocation6 + $0x8] sm:$0xff]  ;;  %vm2115_vm4 = vcmask 57344  }
  0x2c   :  { %v62_v4 = vld [vmem:[%s3307_s2] sm:$0xff]  ;;  %v68_v6 = vsel %vm66_vm2, %v64_v3, 0  ;;  %v75_v9 = vand.u32 4294901760, %v72_v5  ;;  %v531_v14 = vand.u32 4294901760, %v525_v11  ;;  %v1018_v43 = vand.u32 4294901760, %v994_v41  ;;  %v998_v53 = vld [vmem:[#allocation6 + $0x20] sm:$0xff] }
  0x2d   :  { %v61_v8 = vld [vmem:[#allocation3] sm:$0xff]  ;;  %v140_v10 = vand.u32 4294901760, %v68_v6  ;;  %v528_v13 = vand.u32 4294901760, %v62_v4  ;;  %v1021_v44 = vand.u32 4294901760, %v995_v42  ;;  %v996_v46 = vld [vmem:[#allocation6 + $0x10] sm:$0xff]  ;;  %v999_v54 = vld [vmem:[#allocation6 + $0x28] sm:$0xff] }
  0x2e   :  { %v522_v12 = vsel %vm520_vm3, %v61_v8, 0  ;;  %2280 = vmatpush3.msra.mxu0 %v75_v9  ;;  %v152_v16 = vsub.f32 %v72_v5, %v75_v9  ;;  %2305 = vmatpush3.msra.mxu1 %v75_v9  ;;  %v613_v29 = vsub.f32 %v525_v11, %v531_v14  ;;  %v997_v47 = vld [vmem:[#allocation6 + $0x18] sm:$0xff]  ;;  %v3011_v48 = vsub.f32 %v994_v41, %v1018_v43  ;;  %v1000_v60 = vld [vmem:[#allocation6 + $0x30] sm:$0xff]  ;;  %v1003_v5 = vld [vmem:[#allocation6 + $0x48] sm:$0xff] }
  0x2f   :  { %v2967_v15 = vand.u32 4294901760, %v522_v12  ;;  %v141_v17 = vsub.f32 %v68_v6, %v140_v10  ;;  %2284 = vmatprep.subr.mxu0 %v3317_v1  ;;  %v2592_v18 = vpack.c.bf16 %v531_v14, %v528_v13  ;;  %2307 = vmatmul.mubr.f32.vlgmr.msra.gmra.mrb[0].mxu1 %v140_v10  ;;  %v606_v28 = vsub.f32 %v62_v4, %v528_v13  ;;  %v1001_v61 = vld [vmem:[#allocation6 + $0x38] sm:$0xff]  ;;  %v1002_v4 = vld [vmem:[#allocation6 + $0x40] sm:$0xff]  ;;  %v1004_v11 = vld [vmem:[#allocation6 + $0x50] sm:$0xff] }
  0x30   :  { %v153_v21 = vand.u32 4294901760, %v152_v16  ;;  %2600 = vmatprep.subr.bf16.mxu1 %v3315_v22  ;;  %2334 = vmatprep.mubr.msk.f32.mxu1 %vm2861_vm0, %v3317_v1  ;;  %v614_v31 = vand.u32 4294901760, %v613_v29  ;;  %v3009_v45 = vpack.c.bf16 %v1021_v44, %v1018_v43  ;;  %v3013_v49 = vsub.f32 %v995_v42, %v1021_v44 }
  0x31   :  { %v595_v19 = vsub.f32 %v522_v12, %v2967_v15  ;;  %v142_v20 = vand.u32 4294901760, %v141_v17  ;;  %2602 = vmatpush3.bf16.msra.mxu1 %v2592_v18  ;;  %v607_v30 = vand.u32 4294901760, %v606_v28  ;;  %v2598_v39 = vpack.c.bf16 %v613_v29, %v606_v28  ;;  %v1005_v12 = vld [vmem:[#allocation6 + $0x58] sm:$0xff] }
  0x32   :  { %v154_v24 = vsub.f32 %v152_v16, %v153_v21  ;;  %2606 = vmatprep.subr.bf16.mxu1 %v3315_v22  ;;  %v615_v33 = vsub.f32 %v613_v29, %v614_v31  ;;  %v1024_v50 = vand.u32 4294901760, %v996_v46  ;;  %v1027_v51 = vand.u32 4294901760, %v997_v47 }
  0x33   :  { %v143_v23 = vsub.f32 %v141_v17, %v142_v20  ;;  %v596_v25 = vand.u32 4294901760, %v595_v19  ;;  %v608_v32 = vsub.f32 %v606_v28, %v607_v30  ;;  %v2604_v40 = vpack.c.bf16 %v614_v31, %v607_v30 }
  0x34   :  { %v155_v27 = vand.u32 4294901760, %v154_v24  ;;  %v616_v36 = vand.u32 4294901760, %v615_v33  ;;  %v3019_v52 = vpack.c.bf16 %v1027_v51, %v1024_v50  ;;  %v3021_v55 = vsub.f32 %v996_v46, %v1024_v50  ;;  %v1008_v24 = vld [vmem:[#allocation6 + $0x70] sm:$0xff] }
  0x35   :  { %v144_v26 = vand.u32 4294901760, %v143_v23  ;;  %2335 = vmatmul.mubr.f32.vlgmr.msra.gmra.mrb[2].mxu1 %v596_v25  ;;  %v597_v34 = vsub.f32 %v595_v19, %v596_v25  ;;  %v609_v35 = vand.u32 4294901760, %v608_v32  ;;  %v3023_v56 = vsub.f32 %v997_v47, %v1027_v51  ;;  %v1009_v25 = vld [vmem:[#allocation6 + $0x78] sm:$0xff] }
  0x36   :  { %2608 = vmatpush3.bf16.msra.mxu1 %v2592_v18  ;;  %2348 = vmatprep.mubr.msk.f32.mxu1 %vm2861_vm0, %v3317_v1  ;;  %v1030_v57 = vand.u32 4294901760, %v998_v53  ;;  %v1033_v58 = vand.u32 4294901760, %v999_v54  ;;  %v1036_v0 = vand.u32 4294901760, %v1000_v60  ;;  %v1039_v2 = vand.u32 4294901760, %v1001_v61 }
  0x37   :  { %2282 = vmatmul.mubr.f32.vlgmr.msra.gmra.mrb[0].mxu0 %v144_v26  ;;  %2609 = vmatprep.subr.bf16.mxu1 %v3315_v22  ;;  %v598_v37 = vand.u32 4294901760, %v597_v34  ;;  %v2595_v38 = vpack.c.bf16 %v616_v36, %v609_v35  ;;  %v1042_v8 = vand.u32 4294901760, %v1002_v4  ;;  %v1048_v13 = vand.u32 4294901760, %v1004_v11 }
  0x38   :  { %2285 = vmatpush3.msra.mxu0 %v155_v27  ;;  %2286 = vmatprep.mubr.msk.f32.mxu0 %vm2861_vm0, %v3317_v1  ;;  %v3029_v59 = vpack.c.bf16 %v1033_v58, %v1030_v57  ;;  %v3031_v62 = vsub.f32 %v998_v53, %v1030_v57  ;;  %v3033_v63 = vsub.f32 %v999_v54, %v1033_v58  ;;  %v1051_v14 = vand.u32 4294901760, %v1005_v12 }
  0x39   :  { %2289 = vmatprep.subr.mxu0 %v3317_v1  ;;  %2349 = vmatmul.mubr.f32.vlgmr.msra.gmra.mrb[4].mxu1 %v2967_v15  ;;  %v3039_v3 = vpack.c.bf16 %v1039_v2, %v1036_v0  ;;  %v3041_v6 = vsub.f32 %v1000_v60, %v1036_v0  ;;  %v3043_v7 = vsub.f32 %v1001_v61, %v1039_v2  ;;  %v1060_v26 = vand.u32 4294901760, %v1008_v24 }
  0x3a   :  { %2383 = vmatprep.mubr.msk.f32.mxu1 %vm2861_vm0, %v3317_v1  ;;  %2611 = vmatpush3.bf16.msra.mxu1 %v3009_v45  ;;  %v1063_v27 = vand.u32 4294901760, %v1009_v25  ;;  %v3073_v29 = vsub.f32 %v1004_v11, %v1048_v13  ;;  %v3075_v30 = vsub.f32 %v1005_v12, %v1051_v14  ;;  %v1111_v35 = vand.u32 4294901760, %v3011_v48 }
  0x3b   :  { %2287 = vmatmul.mubr.f32.vlgmr.msra.gmra.mrb[2].mxu0 %v140_v10  ;;  %2612 = vmatprep.subr.bf16.mxu1 %v3315_v22  ;;  %v3082_v33 = vsub.f32 %v1008_v24, %v1060_v26  ;;  %v1118_v36 = vand.u32 4294901760, %v3013_v49  ;;  %v1125_v42 = vand.u32 4294901760, %v3021_v55  ;;  %v1132_v43 = vand.u32 4294901760, %v3023_v56 }
  0x3c   :  { %2290 = vmatpush3.msra.mxu0 %v152_v16  ;;  %2291 = vmatprep.mubr.msk.f32.mxu0 %vm2861_vm0, %v3317_v1  ;;  %v3071_v28 = vpack.c.bf16 %v1063_v27, %v1060_v26  ;;  %v3084_v34 = vsub.f32 %v1009_v25, %v1063_v27  ;;  %v1139_v54 = vand.u32 4294901760, %v3031_v62  ;;  %v1146_v57 = vand.u32 4294901760, %v3033_v63 }
  0x3d   :  { %2294 = vmatprep.subr.mxu0 %v3317_v1  ;;  %3320 = vst [vmem:[#allocation12_spill] sm:$0xff] %v3082_v33  ;;  %v3099_v46 = vpack.c.bf16 %v1132_v43, %v1125_v42  ;;  %v1126_v47 = vsub.f32 %v3021_v55, %v1125_v42  ;;  %v1133_v50 = vsub.f32 %v3023_v56, %v1132_v43 }
  0x3e   :  { %2614 = vmatpush3.bf16.msra.mxu1 %v3019_v52  ;;  %v3107_v60 = vpack.c.bf16 %v1146_v57, %v1139_v54  ;;  %v1140_v61 = vsub.f32 %v3031_v62, %v1139_v54  ;;  %v1147_v0 = vsub.f32 %v3033_v63, %v1146_v57 }
  0x3f   :  { %2292 = vmatmul.mubr.f32.vlgmr.msra.gmra.mrb[4].mxu0 %v141_v17  ;;  %2615 = vmatprep.subr.bf16.mxu1 %v3315_v22  ;;  %v3059_v17 = vpack.c.bf16 %v1051_v14, %v1048_v13  ;;  %v1127_v51 = vand.u32 4294901760, %v1126_v47  ;;  %v1134_v53 = vand.u32 4294901760, %v1133_v50 }
  0x40   :  { %2295 = vmatpush3.msra.mxu0 %v75_v9  ;;  %2296 = vmatprep.mubr.msk.f32.mxu0 %vm2861_vm0, %v3317_v1  ;;  %v1045_v9 = vand.u32 4294901760, %v1003_v5  ;;  %v1141_v2 = vand.u32 4294901760, %v1140_v61 }
  0x41   :  { %2299 = vmatprep.subr.mxu0 %v3317_v1  ;;  %v3105_v58 = vpack.c.bf16 %v1134_v53, %v1127_v51 }
  0x42   :  { %2617 = vmatpush3.bf16.msra.mxu1 %v3029_v59  ;;  %v3057_v16 = vsub.f32 %v1003_v5, %v1045_v9  ;;  %v1153_v5 = vand.u32 4294901760, %v3041_v6 }
  0x43   :  { %2297 = vmatmul.mubr.f32.vlgmr.msra.gmra.mrb[6].mxu0 %v142_v20  ;;  %2618 = vmatprep.subr.bf16.mxu1 %v3315_v22 }
  0x44   :  { %2300 = vmatpush3.msra.mxu0 %v153_v21  ;;  %2301 = vmatprep.mubr.msk.f32.mxu0 %vm2861_vm0, %v3317_v1  ;;  %v1154_v12 = vsub.f32 %v3041_v6, %v1153_v5 }
  0x45   :  { %2591 = vmatprep.subr.bf16.mxu0 %v3315_v22 }
  0x46   :  { %2620 = vmatpush3.bf16.msra.mxu1 %v3039_v3  ;;  %v1155_v14 = vand.u32 4294901760, %v1154_v12 }
  0x47   :  { %2302 = vmatmul.mubr.f32.vlgmr.msra.gmra.mrb[8].mxu0 %v140_v10  ;;  %2621 = vmatprep.subr.bf16.mxu1 %v3315_v22  ;;  %v3049_v10 = vpack.c.bf16 %v1045_v9, %v1042_v8 }
  0x48   :  { %2593 = vmatpush3.bf16.msra.mxu0 %v2592_v18  ;;  %2313 = vmatprep.mubr.msk.f32.mxu0 %vm2861_vm0, %v3317_v1  ;;  %v1006_v18 = vld [vmem:[#allocation6 + $0x60] sm:$0xff] }
  0x49   :  { %2594 = vmatprep.subr.bf16.mxu0 %v3315_v22  ;;  %v1054_v20 = vand.u32 4294901760, %v1006_v18 }
  0x4a   :  { %2623 = vmatpush3.bf16.msra.mxu1 %v3049_v10 }
  0x4b   :  { %2314 = vmatmul.mubr.f32.vlgmr.msra.gmra.mrb[10].mxu0 %v598_v37  ;;  %2624 = vmatprep.subr.bf16.mxu1 %v3315_v22  ;;  %v3077_v31 = vsub.f32 %v1006_v18, %v1054_v20  ;;  %v3091_v37 = vpack.c.bf16 %v1118_v36, %v1111_v35 }
  0x4c   :  { %2596 = vmatpush3.bf16.msra.mxu0 %v2595_v38  ;;  %2320 = vmatprep.mubr.msk.f32.mxu0 %vm2861_vm0, %v3317_v1  ;;  %v1112_v38 = vsub.f32 %v3011_v48, %v1111_v35 }
  0x4d   :  { %2597 = vmatprep.subr.bf16.mxu0 %v3315_v22  ;;  %v1195_v50 = vand.u32 4294901760, %v3077_v31 }
  0x4e   :  { %2626 = vmatpush3.bf16.msra.mxu1 %v3059_v17 }
  0x4f   :  { %2321 = vmatmul.mubr.f32.vlgmr.msra.gmra.mrb[12].mxu0 %v2967_v15  ;;  %2627 = vmatprep.subr.bf16.mxu1 %v3315_v22  ;;  %v1196_v57 = vsub.f32 %v3077_v31, %v1195_v50 }
  0x50   :  { %2599 = vmatpush3.bf16.msra.mxu0 %v2598_v39  ;;  %2327 = vmatprep.mubr.msk.f32.mxu0 %vm2861_vm0, %v3317_v1  ;;  %v1119_v39 = vsub.f32 %v3013_v49, %v1118_v36  ;;  %v1181_v36 = vand.u32 4294901760, %v3073_v29 }
  0x51   :  { %2603 = vmatprep.subr.bf16.mxu0 %v3315_v22 }
  0x52   :  { %v1120_v41 = vand.u32 4294901760, %v1119_v39 }
  0x53   :  { %2328 = vmatmul.mubr.f32.vlgmr.msra.gmra.mrb[14].mxu0 %v595_v19  ;;  %v1007_v19 = vld [vmem:[#allocation6 + $0x68] sm:$0xff] }
  0x54   :  { %2605 = vmatpush3.bf16.msra.mxu0 %v2604_v40  ;;  %2341 = vmatprep.mubr.msk.f32.mxu0 %vm2861_vm0, %v3317_v1  ;;  %v1057_v21 = vand.u32 4294901760, %v1007_v19  ;;  %v1113_v40 = vand.u32 4294901760, %v1112_v38  ;;  %v1188_v38 = vand.u32 4294901760, %v3075_v30 }
  0x55   :  { %2681 = vmatprep.subr.bf16.mxu0 %v3315_v22 }
  0x56   :  { %v3065_v23 = vpack.c.bf16 %v1057_v21, %v1054_v20  ;;  %v3079_v32 = vsub.f32 %v1007_v19, %v1057_v21  ;;  %v3097_v44 = vpack.c.bf16 %v1120_v41, %v1113_v40  ;;  %v1174_v20 = vand.u32 4294901760, %v3057_v16 }
  0x57   :  { %2342 = vmatmul.mubr.f32.vlgmr.msra.gmra.mrb[16].mxu0 %v2967_v15  ;;  %v3055_v15 = vsub.f32 %v1002_v4, %v1042_v8  ;;  %v1148_v4 = vand.u32 4294901760, %v1147_v0  ;;  %v1160_v8 = vand.u32 4294901760, %v3043_v7  ;;  %v3131_v40 = vpack.c.bf16 %v1188_v38, %v1181_v36 }
  0x58   :  { %2488 = vmatprep.mubr.msk.f32.mxu0 %vm2861_vm0, %v3317_v1  ;;  %2683 = vmatpush3.bf16.msra.mxu0 %v3009_v45  ;;  %v1175_v26 = vsub.f32 %v3057_v16, %v1174_v20  ;;  %v1182_v41 = vsub.f32 %v3073_v29, %v1181_v36  ;;  %v1189_v42 = vsub.f32 %v3075_v30, %v1188_v38  ;;  %v1202_v51 = vand.u32 4294901760, %v3079_v32 }
  0x59   :  { %2684 = vmatprep.subr.bf16.mxu0 %v3315_v22  ;;  %2629 = vmatpush3.bf16.msra.mxu1 %v3065_v23  ;;  %v3113_v9 = vpack.c.bf16 %v1148_v4, %v1141_v2  ;;  %v3115_v11 = vpack.c.bf16 %v1160_v8, %v1153_v5  ;;  %v1161_v13 = vsub.f32 %v3043_v7, %v1160_v8  ;;  %v1167_v19 = vand.u32 4294901760, %v3055_v15 }
  0x5a   :  { %2630 = vmatprep.subr.bf16.mxu1 %v3315_v22  ;;  %v1176_v35 = vand.u32 4294901760, %v1175_v26  ;;  %v1183_v43 = vand.u32 4294901760, %v1182_v41  ;;  %v1190_v47 = vand.u32 4294901760, %v1189_v42  ;;  %v3139_v54 = vpack.c.bf16 %v1202_v51, %v1195_v50 }
  0x5b   :  { %v1162_v18 = vand.u32 4294901760, %v1161_v13  ;;  %v3123_v24 = vpack.c.bf16 %v1174_v20, %v1167_v19  ;;  %v1168_v25 = vsub.f32 %v3055_v15, %v1167_v19  ;;  %v1203_v61 = vsub.f32 %v3079_v32, %v1202_v51 }
  0x5c   :  { %2686 = vmatpush3.bf16.msra.mxu0 %v3019_v52  ;;  %v3137_v53 = vpack.c.bf16 %v1190_v47, %v1183_v43  ;;  %v1197_v0 = vand.u32 4294901760, %v1196_v57  ;;  %v1209_v4 = vand.u32 4294901760, %v3082_v33  ;;  %v1216_v5 = vand.u32 4294901760, %v3084_v34 }
  0x5d   :  { %2687 = vmatprep.subr.bf16.mxu0 %v3315_v22  ;;  %2632 = vmatpush3.bf16.msra.mxu1 %v3071_v28  ;;  %v3121_v21 = vpack.c.bf16 %v1162_v18, %v1155_v14  ;;  %v1169_v27 = vand.u32 4294901760, %v1168_v25  ;;  %v1204_v2 = vand.u32 4294901760, %v1203_v61 }
  0x5e   :  { %2633 = vmatprep.subr.bf16.mxu1 %v3315_v22  ;;  %v3147_v12 = vpack.c.bf16 %v1216_v5, %v1209_v4  ;;  %v1210_v13 = vsub.f32 %v3082_v33, %v1209_v4  ;;  %v1217_v14 = vsub.f32 %v3084_v34, %v1216_v5 }
  0x5f   :  { %v3129_v39 = vpack.c.bf16 %v1176_v35, %v1169_v27  ;;  %v3145_v8 = vpack.c.bf16 %v1204_v2, %v1197_v0 }
  0x60   :  { %2689 = vmatpush3.bf16.msra.mxu0 %v3029_v59  ;;  %v1211_v18 = vand.u32 4294901760, %v1210_v13  ;;  %v1218_v19 = vand.u32 4294901760, %v1217_v14 }
  0x61   :  { %2690 = vmatprep.subr.bf16.mxu0 %v3315_v22 }
  0x62   :  { %v3151_v20 = vpack.c.bf16 %v1218_v19, %v1211_v18 }
  0x64   :  { %2692 = vmatpush3.bf16.msra.mxu0 %v3039_v3 }
  0x65   :  { %2693 = vmatprep.subr.bf16.mxu0 %v3315_v22 }
  0x68   :  { %2695 = vmatpush3.bf16.msra.mxu0 %v3049_v10 }
  0x69   :  { %2696 = vmatprep.subr.bf16.mxu0 %v3315_v22 }
  0x6c   :  { %2698 = vmatpush3.bf16.msra.mxu0 %v3059_v17 }
  0x6d   :  { %2699 = vmatprep.subr.bf16.mxu0 %v3315_v22 }
  0x70   :  { %2701 = vmatpush3.bf16.msra.mxu0 %v3065_v23 }
  0x71   :  { %2702 = vmatprep.subr.bf16.mxu0 %v3315_v22 }
  0x74   :  { %2704 = vmatpush3.bf16.msra.mxu0 %v3071_v28 }
  0x75   :  { %2705 = vmatprep.subr.bf16.mxu0 %v3315_v22 }
 0x102   :  { %v516_v43 = vpop.f32.mrb[0].mxu1 }
 0x103   :  { %v2308_v47 = vpop.f32.mrb[1].mxu1 }
 0x108   :  { %v832_v50 = vpop.f32.mrb[2].mxu1 }
 0x109   :  { %v2336_v51 = vpop.f32.mrb[3].mxu1 }
 0x10a   :  { %v146_v57 = vpop.f32.mrb[0].mxu0 }
 0x10b   :  { %v2283_v61 = vpop.f32.mrb[1].mxu0 }
 0x10c   :  { %v982_v0 = vpop.f32.mrb[4].mxu1 }
 0x10d   :  { %v2350_v2 = vpop.f32.mrb[5].mxu1 }
 0x10e   :  { %v222_v4 = vpop.f32.mrb[2].mxu0 }
 0x10f   :  { %v223_v5 = vadd.f32 %v222_v4, %v146_v57  ;;  %v2288_v13 = vpop.f32.mrb[3].mxu0 }
 0x112   :  { %v296_v14 = vpop.f32.mrb[4].mxu0 }
 0x113   :  { %v297_v18 = vadd.f32 %v296_v14, %v223_v5  ;;  %v2293_v19 = vpop.f32.mrb[5].mxu0 }
 0x116   :  { %v370_v38 = vpop.f32.mrb[6].mxu0 }
 0x117   :  { %v371_v36 = vadd.f32 %v370_v38, %v297_v18  ;;  %v2298_v41 = vpop.f32.mrb[7].mxu0  ;;  %v2133_v38 = vld [vmem:[%s3309_s4] ss:$0 sm:$0xff] }
 0x11a   :  { %v444_v35 = vpop.f32.mrb[8].mxu0 }
 0x11b   :  { %v445_v27 = vadd.f32 %v444_v35, %v371_v36  ;;  %v2303_v42 = vpop.f32.mrb[9].mxu0 }
 0x11d   :  { %v517_v26 = vadd.f32 %v516_v43, %v445_v27 }
 0x11e   :  { %v600_v47 = vpop.f32.mrb[10].mxu0 }
 0x11f   :  { %v601_v25 = vadd.f32 %v600_v47, %v517_v26  ;;  %v2315_v51 = vpop.f32.mrb[11].mxu0 }
 0x122   :  { %v681_v22 = vpop.f32.mrb[12].mxu0 }
 0x123   :  { %v682_v61 = vadd.f32 %v681_v22, %v601_v25  ;;  %v2322_v1 = vpop.f32.mrb[13].mxu0  ;;  %v3322_v25 = vmov 0.0|0.0  }
 0x126   :  { %v757_v2 = vpop.f32.mrb[14].mxu0 }
 0x127   :  { %v758_v33 = vadd.f32 %v757_v2, %v682_v61  ;;  %v2329_v57 = vpop.f32.mrb[15].mxu0 }
 0x129   :  { %v833_v4 = vadd.f32 %v832_v50, %v758_v33  ;;  %v3321_v33 = vmov 0.0  }
 0x12a   :  { %v909_v13 = vpop.f32.mrb[16].mxu0 }
 0x12b   :  { %v910_v5 = vadd.f32 %v909_v13, %v833_v4  ;;  %v2343_v14 = vpop.f32.mrb[17].mxu0 }
 0x12d   :  { %v983_v35 = vadd.f32 %v982_v0, %v910_v5 }
 0x12f   :  { %v993_v36 = vadd.f32 %v2133_v38, %v983_v35 }
 0x131   :  { %v3172_v27 = vand.u32 4294901760, %v993_v36 }
 0x133   :  { %v3175_v26 = vsub.f32 %v993_v36, %v3172_v27 }
 0x135   :  { %v1100_v1 = vand.u32 4294901760, %v3175_v26 }
 0x137   :  { %2489 = vmatmul.mubr.f32.vlgmr.msra.gmra.mrb[18].mxu0 %v1100_v1  ;;  %v1101_v22 = vsub.f32 %v3175_v26, %v1100_v1 }
 0x138   :  { %2707 = vmatpush3.bf16.msra.mxu0 %v3091_v37  ;;  %2523 = vmatprep.mubr.msk.f32.mxu0 %vm2861_vm0, %v3321_v33  ;;  %v3323_v37 = vpack.c.bf16 %v3013_v49, %v3011_v48  ;;  %v3325_v48 = vpack.c.bf16 %v3033_v63, %v3031_v62  ;;  %v3326_v49 = vpack.c.bf16 %v3043_v7, %v3041_v6  ;;  %v1659_v63 = vld [vmem:[#allocation2] sm:$0x1] }
 0x139   :  { %2708 = vmatprep.subr.bf16.mxu0 %v3322_v25  ;;  %v1102_v41 = vand.u32 4294901760, %v1101_v22  ;;  %v1658_v6 = vld [vmem:[%s3312_s7] sm:$0x1] }
 0x13a   :  { %v1735_v7 = vand.u32 4294901760, %v1658_v6 }
 0x13b   :  { %2384 = vmatmul.mubr.f32.vlgmr.msra.gmra.mrb[6].mxu1 %v1102_v41 }
 0x13c   :  { %2635 = vmatpush3.bf16.msra.mxu1 %v3097_v44  ;;  %2710 = vmatpush3.bf16.msra.mxu0 %v3099_v46 }
 0x13d   :  { %2636 = vmatprep.subr.bf16.mxu1 %v3322_v25  ;;  %2711 = vmatprep.subr.bf16.mxu0 %v3322_v25 }
 0x13e   :  { %2418 = vmatprep.mubr.msk.f32.mxu1 %vm2861_vm0, %v3321_v33 }
 0x140   :  { %2638 = vmatpush3.bf16.msra.mxu1 %v3105_v58  ;;  %2713 = vmatpush3.bf16.msra.mxu0 %v3107_v60 }
 0x141   :  { %2639 = vmatprep.subr.bf16.mxu1 %v3322_v25  ;;  %2714 = vmatprep.subr.bf16.mxu0 %v3322_v25 }
 0x144   :  { %2641 = vmatpush3.bf16.msra.mxu1 %v3113_v9  ;;  %2716 = vmatpush3.bf16.msra.mxu0 %v3115_v11  ;;  %v1665_v11 = vlaneseq }
 0x145   :  { %2642 = vmatprep.subr.bf16.mxu1 %v3322_v25  ;;  %2717 = vmatprep.subr.bf16.mxu0 %v3322_v25 }
 0x148   :  { %2644 = vmatpush3.bf16.msra.mxu1 %v3121_v21  ;;  %2719 = vmatpush3.bf16.msra.mxu0 %v3123_v24  ;;  %v1666_v21 = vshrl.u32 %v1665_v11, 7 }
 0x149   :  { %2645 = vmatprep.subr.bf16.mxu1 %v3322_v25  ;;  %2720 = vmatprep.subr.bf16.mxu0 %v3322_v25 }
 0x14a   :  { %v1667_v24 = vsub.s32 0, %v1666_v21 }
 0x14c   :  { %2647 = vmatpush3.bf16.msra.mxu1 %v3129_v39  ;;  %2722 = vmatpush3.bf16.msra.mxu0 %v3131_v40 }
 0x14d   :  { %2648 = vmatprep.subr.bf16.mxu1 %v3322_v25  ;;  %2723 = vmatprep.subr.bf16.mxu0 %v3322_v25 }
 0x150   :  { %2650 = vmatpush3.bf16.msra.mxu1 %v3137_v53  ;;  %2725 = vmatpush3.bf16.msra.mxu0 %v3139_v54 }
 0x151   :  { %2651 = vmatprep.subr.bf16.mxu1 %v3322_v25  ;;  %2726 = vmatprep.subr.bf16.mxu0 %v3322_v25 }
 0x154   :  { %2653 = vmatpush3.bf16.msra.mxu1 %v3145_v8  ;;  %2728 = vmatpush3.bf16.msra.mxu0 %v3147_v12 }
 0x155   :  { %2654 = vmatprep.subr.bf16.mxu1 %v3322_v25  ;;  %2729 = vmatprep.subr.bf16.mxu0 %v3322_v25 }
 0x157   :  { %2524 = vmatmul.mubr.f32.vlgmr.msra.gmra.mrb[18].mxu0 %v3172_v27 }
 0x158   :  { %2656 = vmatpush3.bf16.msra.mxu1 %v3151_v20  ;;  %2731 = vmatpush3.bf16.msra.mxu0 %v3009_v45  ;;  %v3324_v45 = vpack.c.bf16 %v3023_v56, %v3021_v55  ;;  %v3328_v55 = vpack.c.bf16 %v3075_v30, %v3073_v29  ;;  %v3329_v56 = vpack.c.bf16 %v3079_v32, %v3077_v31 }
 0x159   :  { %2657 = vmatprep.subr.bf16.mxu1 %v3322_v25  ;;  %2732 = vmatprep.subr.bf16.mxu0 %v3322_v25 }
 0x15a   :  { %2558 = vmatprep.mubr.msk.f32.mxu0 %vm2861_vm0, %v3321_v33 }
 0x15b   :  { %2419 = vmatmul.mubr.f32.vlgmr.msra.gmra.mrb[6].mxu1 %v3172_v27 }
 0x15c   :  { %2659 = vmatpush3.bf16.msra.mxu1 %v3323_v37  ;;  %2734 = vmatpush3.bf16.msra.mxu0 %v3019_v52  ;;  %v3327_v52 = vpack.c.bf16 %v3057_v16, %v3055_v15 }
 0x15d   :  { %2660 = vmatprep.subr.bf16.mxu1 %v3322_v25  ;;  %2735 = vmatprep.subr.bf16.mxu0 %v3322_v25 }
 0x15e   :  { %2453 = vmatprep.mubr.msk.f32.mxu1 %vm2861_vm0, %v3321_v33 }
 0x160   :  { %2662 = vmatpush3.bf16.msra.mxu1 %v3324_v45  ;;  %2737 = vmatpush3.bf16.msra.mxu0 %v3029_v59  ;;  %v3330_v59 = vld [vmem:[#allocation12_spill] sm:$0xff] }
 0x161   :  { %2663 = vmatprep.subr.bf16.mxu1 %v3322_v25  ;;  %2738 = vmatprep.subr.bf16.mxu0 %v3322_v25  ;;  %v3331_v62 = vpack.c.bf16 %v3084_v34, %v3330_v59 }
 0x164   :  { %2665 = vmatpush3.bf16.msra.mxu1 %v3325_v48  ;;  %2740 = vmatpush3.bf16.msra.mxu0 %v3039_v3  ;;  %v2863_v3 = vmov 0  }
 0x165   :  { %2666 = vmatprep.subr.bf16.mxu1 %v3322_v25  ;;  %2741 = vmatprep.subr.bf16.mxu0 %v3322_v25 }
 0x166   :  { %2783 = vset.pattern.permute.xlu0 %v2863_v3 }
 0x167   :  { %1662 = vperm.xlu0 %2783, %v1659_v63  }
 0x168   :  { %2668 = vmatpush3.bf16.msra.mxu1 %v3326_v49  ;;  %2743 = vmatpush3.bf16.msra.mxu0 %v3049_v10  ;;  %v1736_v10 = vsub.f32 %v1658_v6, %v1735_v7 }
 0x169   :  { %2669 = vmatprep.subr.bf16.mxu1 %v3322_v25  ;;  %2744 = vmatprep.subr.bf16.mxu0 %v3322_v25 }
 0x16c   :  { %2671 = vmatpush3.bf16.msra.mxu1 %v3327_v52  ;;  %2746 = vmatpush3.bf16.msra.mxu0 %v3059_v17  ;;  %v2134_v17 = vld [vmem:[%s3311_s6] ss:$0 sm:$0xff]  ;;  %s2864_s6 = smov [#allocation8]  }
 0x16d   :  { %2672 = vmatprep.subr.bf16.mxu1 %v3322_v25  ;;  %2747 = vmatprep.subr.bf16.mxu0 %v3322_v25  ;;  %s2123_s7 = sshll.u32 %s2864_s6, 4  ;;  %s2124_s7 = int_to_ptr.vmem [resolvable:$true] %s2123_s7 }
 0x16e   :  { %s2828_s22 = scalar_lea.vmem %s2124_s7, 16  ;;  %s2832_s23 = scalar_lea.vmem %s2124_s7, 32 }
 0x16f   :  { %p2829_p2 = scmp.ne.s32.totalorder %s2124_s7, %s2828_s22  ;;  %p2833_p3 = scmp.lt.s32.totalorder %s2124_s7, %s2124_s7 }
 0x170   :  { %2674 = vmatpush3.bf16.msra.mxu1 %v3328_v55  ;;  %2749 = vmatpush3.bf16.msra.mxu0 %v3065_v23  ;;  %v1737_v23 = vand.u32 4294901760, %v1736_v10  ;;  %p2834_p4 = scmp.lt.s32.totalorder %s2832_s23, %s2828_s22 }
 0x171   :  { %2675 = vmatprep.subr.bf16.mxu1 %v3322_v25  ;;  %2750 = vmatprep.subr.bf16.mxu0 %v3322_v25 }
 0x172   :  { %v1738_v31 = vsub.f32 %v1736_v10, %v1737_v23  ;;  %p2835_p5 = por %p2834_p4, %p2833_p3 }
 0x174   :  { %2677 = vmatpush3.bf16.msra.mxu1 %v3329_v56  ;;  %2752 = vmatpush3.bf16.msra.mxu0 %v3071_v28  ;;  %v1739_v44 = vand.u32 4294901760, %v1738_v31  ;;  %p2836_p6 = pnand %p2835_p5, %p2829_p2 }
 0x175   :  { %2678 = vmatprep.subr.bf16.mxu1 %v3322_v25 }
 0x177   :  { %2559 = vmatmul.mubr.f32.vlgmr.msra.gmra.mrb[18].mxu0 %v3172_v27 }
 0x178   :  { %2680 = vmatpush3.bf16.msra.mxu1 %v3331_v62 }
 0x179   :  { %2561 = vmatprep.subr.mxu1 %v3321_v33 }
 0x17b   :  { %2454 = vmatmul.mubr.f32.vlgmr.msra.gmra.mrb[6].mxu1 %v3175_v26 }
 0x17c   :  { %2563 = vmatprep.mubr.msk.f32.mxu1 %vm2861_vm0, %v3321_v33 }
 0x1e6   :  { %v1663_v39 = vpop.permute.xlu0 %1662 }
 0x1e7   :  { %v1668_v40 = vrot.slane %v1663_v39, %v1667_v24 }
 0x24a   :  { %v1654_v15 = vpop.f32.mrb[18].mxu0 }
 0x24b   :  { %v2560_v16 = vpop.f32.mrb[19].mxu0 }
 0x24e   :  { %v1359_v28 = vpop.f32.mrb[6].mxu1 }
 0x24f   :  { %v2753_v29 = vadd.f32 %v2134_v17, %v1359_v28  ;;  %v2455_v30 = vpop.f32.mrb[7].mxu1 }
 0x251   :  { %v2754_v32 = vadd.f32 %v2753_v29, %v1654_v15 }
 0x253   :  { %v1670_v34 = vand.u32 4294901760, %v2754_v32 }
 0x255   :  { %v1747_v46 = vsub.f32 %v2754_v32, %v1670_v34  ;;  %2562 = vmatpush3.xpose.msra.mxu1 %v1670_v34 }
 0x256   :  { %2566 = vmatprep.subr.mxu1 %v3321_v33 }
 0x257   :  { %v1748_v58 = vand.u32 4294901760, %v1747_v46 }
 0x258   :  { %2564 = vmatmul.mubr.f32.vlgmr.msra.gmra.mrb[8].mxu1 %v1739_v44 }
 0x259   :  { %v1749_v60 = vsub.f32 %v1747_v46, %v1748_v58  ;;  %2568 = vmatprep.mubr.msk.f32.mxu1 %vm2861_vm0, %v3321_v33 }
 0x25b   :  { %v1750_v9 = vand.u32 4294901760, %v1749_v60 }
 0x25d   :  { %2567 = vmatpush3.xpose.msra.mxu1 %v1750_v9 }
 0x25e   :  { %2571 = vmatprep.subr.mxu1 %v3321_v33 }
 0x260   :  { %2569 = vmatmul.mubr.f32.vlgmr.msra.gmra.mrb[8].mxu1 %v1735_v7 }
 0x261   :  { %2572 = vmatpush3.xpose.msra.mxu1 %v1747_v46  ;;  %2573 = vmatprep.mubr.msk.f32.mxu1 %vm2861_vm0, %v3321_v33 }
 0x262   :  { %2576 = vmatprep.subr.mxu1 %v3321_v33 }
 0x268   :  { %2574 = vmatmul.mubr.f32.vlgmr.msra.gmra.mrb[8].mxu1 %v1736_v10 }
 0x269   :  { %2577 = vmatpush3.xpose.msra.mxu1 %v1670_v34  ;;  %2578 = vmatprep.mubr.msk.f32.mxu1 %vm2861_vm0, %v3321_v33 }
 0x26a   :  { %2581 = vmatprep.subr.mxu1 %v3321_v33 }
 0x270   :  { %2579 = vmatmul.mubr.f32.vlgmr.msra.gmra.mrb[8].mxu1 %v1737_v23 }
 0x271   :  { %2582 = vmatpush3.xpose.msra.mxu1 %v1748_v58  ;;  %2583 = vmatprep.mubr.msk.f32.mxu1 %vm2861_vm0, %v3321_v33 }
 0x272   :  { %2586 = vmatprep.subr.mxu1 %v3321_v33 }
 0x278   :  { %2584 = vmatmul.mubr.f32.vlgmr.msra.gmra.mrb[8].mxu1 %v1735_v7 }
 0x279   :  { %2587 = vmatpush3.xpose.msra.mxu1 %v1670_v34  ;;  %2588 = vmatprep.mubr.msk.f32.mxu1 %vm2861_vm0, %v3321_v33 }
 0x280   :  { %2589 = vmatmul.mubr.f32.vlgmr.msra.gmra.mrb[8].mxu1 %v1735_v7 }
 0x353   :  { %v2111_v53 = vpop.f32.mrb[8].mxu1 }
 0x354   :  { %v2755_v54 = vadd.f32 %v2111_v53, %v1668_v40  ;;  %v2590_v8 = vpop.f32.mrb[9].mxu1 }
 0x356   :  { %2116 = vst.msk [vmem:[#allocation8] sm:$0x1] %vm2115_vm4, %v2755_v54 }
 0x357   :  { %2839 = shalt.err (!%p2836_p6)
}
 0x358   :  { %s2840_s26 = scalar_lea.hbm %s3314_s9, 16 }
 0x359   :  { %p2841_p7 = scmp.ne.s32.totalorder %s3314_s9, %s2840_s26  ;;  %p2844_p8 = scmp.lt.u32.totalorder %s2840_s26, %s3314_s9 }
 0x35b   :  { %p2846_p9 = pnand %p2844_p8, %p2841_p7 }
 0x35d   :  { %2849 = shalt.err (!%p2846_p9)
}
 0x35e   :  { %2126 = dma.vmem_to_hbm [thread:$0]  %s2124_s7, 16, %s3314_s9, [#allocation5]  }
 0x35f   :  { %2854 = dma.done.wait [#allocation5], 16  }
 0x360   :  { %2855 = vsyncadd [#allocation5], 4294967280 }
 0x361   :  { %2130 = vsyncpa [#allocation4], 1 }
 0x362   :  { %2131 = vsyncpa [#allocation7], 1 }
 0x363   :  { %2132 = vsyncpa [#allocation5], 1 }

</bundles_post_ra>
